<compile_context>
chip_gen: v7x
topology: tpu7x:2x2x1
jax: 0.10.0
libtpu: 0.0.40
codegen_flags: <defaults>
</compile_context>

<pallas_src>
import jax
import jax.numpy as jnp
from jax.experimental import pallas as pl
from jax.experimental.pallas import tpu as pltpu

_LANE = 512        # lane-dense slab width (multiple of 128)
_ROW_TILE = 1024   # rows per block -> 1024 * 512 * 4 B = 2 MiB input block


def _affine_kernel(w_ref, b_ref, x_ref, o_ref):
    # w_ref / b_ref are (1, 1) SMEM scalars; x_ref / o_ref are VMEM tiles.
    # Keep the body exactly one fused multiply-add (load/store bound kernel).
    o_ref[...] = x_ref[...] * w_ref[0, 0] + b_ref[0, 0]


def dummy_model_forward(x_nchw, weight, bias):
    """Applies Conv2d(1,1,1) to an NCHW input with C=1 via a Pallas kernel.

    Args:
      x_nchw: f32[N, 1, H, W]
      weight: f32 scalar (Conv2d weight of shape (1,1,1,1) squeezed)
      bias:   f32 scalar (Conv2d bias of shape (1,) squeezed)
    Returns:
      f32[N, 1, H, W]
    """
    n, c, h, w = x_nchw.shape
    assert c == 1, "DummyModel's conv expects 1 input channel"

    total = n * c * h * w
    # Lane-dense 2D slab: flatten and view as (rows, _LANE); pad tail if needed.
    padded_total = pl.cdiv(total, _LANE) * _LANE
    pad = padded_total - total
    flat = x_nchw.reshape(total)
    if pad:
        flat = jnp.pad(flat, (0, pad))
    rows = padded_total // _LANE
    x2d = flat.reshape(rows, _LANE)

    # Row tile: big block for large inputs, full-array block for small ones.
    # (bt == rows satisfies the "equal full array dim" rule when rows < _ROW_TILE.)
    bt = _ROW_TILE if rows >= _ROW_TILE else rows
    grid = (pl.cdiv(rows, bt),)

    w_smem = jnp.asarray(weight, jnp.float32).reshape(1, 1)
    b_smem = jnp.asarray(bias, jnp.float32).reshape(1, 1)

    out2d = pl.pallas_call(
        _affine_kernel,
        out_shape=jax.ShapeDtypeStruct((rows, _LANE), x2d.dtype),
        grid_spec=pltpu.PrefetchScalarGridSpec(
            num_scalar_prefetch=0,
            grid=grid,
            in_specs=[
                pl.BlockSpec(memory_space=pltpu.SMEM),  # weight scalar
                pl.BlockSpec(memory_space=pltpu.SMEM),  # bias scalar
                pl.BlockSpec((bt, _LANE), lambda i: (i, 0)),
            ],
            out_specs=pl.BlockSpec((bt, _LANE), lambda i: (i, 0)),
        ),
        compiler_params=pltpu.CompilerParams(
            dimension_semantics=("parallel",),
            vmem_limit_bytes=48 * 1024 * 1024,
        ),
    )(w_smem, b_smem, x2d)

    out_flat = out2d.reshape(padded_total)
    if pad:
        out_flat = out_flat[:total]
    return out_flat.reshape(n, c, h, w)


if __name__ == "__main__":
    key = jax.random.PRNGKey(0)
    k_x, k_w, k_b = jax.random.split(key, 3)

    # Deterministic parameters for Conv2d(1, 1, 1): weight (1,1,1,1), bias (1,).
    weight = jax.random.normal(k_w, (), dtype=jnp.float32) * 0.5
    bias = jax.random.normal(k_b, (), dtype=jnp.float32) * 0.1

    # Small NCHW input consistent with the module (C must be 1).
    x = jax.random.normal(k_x, (2, 1, 16, 16), dtype=jnp.float32)

    y = dummy_model_forward(x, weight, bias)
    y = jax.block_until_ready(y)

    # Reference check against plain JAX (1x1 conv == affine).
    y_ref = x * weight + bias
    assert y.shape == x.shape
    assert jnp.allclose(y, y_ref, atol=1e-6, rtol=1e-6), "mismatch vs reference"

    print("KERNEL_OK")
</pallas_src>

<mosaic_0001>
module attributes {stable_mosaic.version = 11 : i64} {
  func.func @_affine_kernel(%arg0: i32, %arg1: memref<1x1xf32, #tpu.memory_space<smem>>, %arg2: memref<1x1xf32, #tpu.memory_space<smem>>, %arg3: memref<1x512xf32, #tpu.memory_space<vmem>>, %arg4: memref<1x512xf32, #tpu.memory_space<vmem>>) attributes {dimension_semantics = [#tpu.dimension_semantics<parallel>], iteration_bounds = array<i64: 1>, scalar_prefetch = 0 : i64, scratch_operands = 0 : i64, tpu.core_type = #tpu.core_type<tc>, window_params = [{transform_indices = @transform_0, window_bounds = array<i64: 1, 1>}, {transform_indices = @transform_1, window_bounds = array<i64: 1, 1>}, {transform_indices = @transform_2, window_bounds = array<i64: 1, 512>}, {transform_indices = @transform_3, window_bounds = array<i64: 1, 512>}]} {
    %c0 = arith.constant 0 : index
    %c0_0 = arith.constant 0 : index
    %0 = vector.load %arg3[%c0, %c0_0] : memref<1x512xf32, #tpu.memory_space<vmem>>, vector<1x512xf32>
    %c0_1 = arith.constant 0 : index
    %c0_2 = arith.constant 0 : index
    %1 = memref.load %arg1[%c0_1, %c0_2] : memref<1x1xf32, #tpu.memory_space<smem>>
    %2 = vector.broadcast %1 : f32 to vector<1x512xf32>
    %3 = arith.mulf %0, %2 : vector<1x512xf32>
    %c0_3 = arith.constant 0 : index
    %c0_4 = arith.constant 0 : index
    %4 = memref.load %arg2[%c0_3, %c0_4] : memref<1x1xf32, #tpu.memory_space<smem>>
    %5 = vector.broadcast %4 : f32 to vector<1x512xf32>
    %6 = arith.addf %3, %5 : vector<1x512xf32>
    %c0_5 = arith.constant 0 : index
    %c0_6 = arith.constant 0 : index
    %7 = vector.load %arg4[%c0_5, %c0_6] : memref<1x512xf32, #tpu.memory_space<vmem>>, vector<1x512xf32>
    tpu.vector_store %arg4[%c0_5, %c0_6], %6 {strides = array<i32>} : memref<1x512xf32, #tpu.memory_space<vmem>>, vector<1x512xf32>,
    return
  }
  func.func @transform_0(%arg0: i32) -> (i32, i32) {
    %c0_i32 = arith.constant 0 : i32
    %c0_i32_0 = arith.constant 0 : i32
    %c0_i32_1 = arith.constant 0 : i32
    return %c0_i32, %c0_i32_0 : i32, i32
  }
  func.func @transform_1(%arg0: i32) -> (i32, i32) {
    %c0_i32 = arith.constant 0 : i32
    %c0_i32_0 = arith.constant 0 : i32
    %c0_i32_1 = arith.constant 0 : i32
    return %c0_i32, %c0_i32_0 : i32, i32
  }
  func.func @transform_2(%arg0: i32) -> (i32, i32) {
    %c0_i32 = arith.constant 0 : i32
    %c0_i32_0 = arith.constant 0 : i32
    return %arg0, %c0_i32 : i32, i32
  }
  func.func @transform_3(%arg0: i32) -> (i32, i32) {
    %c0_i32 = arith.constant 0 : i32
    %c0_i32_0 = arith.constant 0 : i32
    return %arg0, %c0_i32 : i32, i32
  }
}

</mosaic_0001>

<bundles_post_ra>
// kernel: tpu_custom_call.1
= control target key start
LH: loop header
LB: loop body
LE: loop exit
PB: predicated region body
PF: predicated region fallthrough
CT: control target
= control target key end

     0   :  { %v24_v3 = vlaneseq  ;;  %s110_s0 = inlined_call_operand.<no memory space> [shape: f32[1,1], index: 0, kind: input, shape index: {}]   ;;  %s111_s1 = inlined_call_operand.<no memory space> [shape: f32[1,1], index: 1, kind: input, shape index: {}]   ;;  %s112_s2 = inlined_call_operand.vmem [shape: f32[1,512], index: 2, kind: input, shape index: {}]   ;;  %s113_s3 = inlined_call_operand.hbm [shape: f32[1,512], index: 3, kind: output, shape index: {}]  }
   0x1   :  { %v17_v0 = vld [vmem:[%s112_s2] sm:$0xf]  ;;  %v19_v1 = vstv %s110_s0  ;;  %v22_v2 = vstv %s111_s1 }
   0x2   :  { %10 = vsyncpa [#allocation5], 0  ;;  %v20_v4 = vmul.f32 %v19_v1, %v17_v0  ;;  %s68_s18 = smov [#allocation4]   ;;  %vm26_vm0 = vcmp.lt.s32.totalorder %v24_v3, 512 }
   0x3   :  { %s35_s19 = sshll.u32 %s68_s18, 4  ;;  %s36_s19 = int_to_ptr.vmem [resolvable:$true] %s35_s19 }
   0x4   :  { %v23_v5 = vadd.f32 %v22_v2, %v20_v4  ;;  %s44_s20 = scalar_lea.vmem %s36_s19, 64  ;;  %p49_p1 = scmp.lt.s32.totalorder %s36_s19, %s36_s19 }
   0x5   :  { %p45_p0 = scmp.ne.s32.totalorder %s36_s19, %s44_s20  ;;  %p50_p2 = scmp.lt.s32.totalorder %s44_s20, %s44_s20 }
   0x6   :  { %28 = vst.msk [vmem:[#allocation4] sm:$0xf] %vm26_vm0, %v23_v5 }
   0x7   :  { %p51_p3 = por %p50_p2, %p49_p1 }
   0x9   :  { %p52_p4 = pnand %p51_p3, %p45_p0 }
   0xb   :  { %55 = shalt.err (!%p52_p4)
}
   0xc   :  { %s56_s1 = scalar_lea.hbm %s113_s3, 64 }
   0xd   :  { %p57_p5 = scmp.ne.s32.totalorder %s113_s3, %s56_s1  ;;  %p60_p6 = scmp.lt.u32.totalorder %s56_s1, %s113_s3 }
   0xf   :  { %p62_p7 = pnand %p60_p6, %p57_p5 }
  0x11   :  { %65 = shalt.err (!%p62_p7)
}
  0x12   :  { %38 = dma.vmem_to_hbm [thread:$0]  %s36_s19, 64, %s113_s3, [#allocation5]  }
  0x13   :  { %66 = dma.done.wait [#allocation5], 64  }
  0x14   :  { %67 = vsyncadd [#allocation5], 4294967232 }
  0x15   :  { %42 = vsyncpa [#allocation5], 1 }

</bundles_post_ra>
